<compile_context>
chip_gen: v7x
topology: tpu7x:2x2x1
jax: 0.10.0
libtpu: 0.0.40
codegen_flags: <defaults>
</compile_context>

<pallas_src>
import functools
import math

import jax
import jax.numpy as jnp
from jax.experimental import pallas as pl
from jax.experimental.pallas import tpu as pltpu

_TARGET_BLOCK_BYTES = 2 * 1024 * 1024  # per x block; 3 streams x 2 buffers << scoped VMEM


def make_pe_buffer(max_len: int, input_emb: int) -> jnp.ndarray:
    """(max_len, 1, input_emb) sinusoidal PE buffer, identical to the torch init."""
    position = jnp.arange(0, max_len, dtype=jnp.float32)[:, None]            # (L, 1)
    div_term = jnp.exp(
        jnp.arange(0, input_emb, 2, dtype=jnp.float32)
        * (-math.log(10000.0) / input_emb)
    )                                                                         # (E/2,)
    pe = jnp.zeros((max_len, input_emb), dtype=jnp.float32)
    pe = pe.at[:, 0::2].set(jnp.sin(position * div_term))
    pe = pe.at[:, 1::2].set(jnp.cos(position * div_term))
    return pe[:, None, :]  # unsqueeze(0).transpose(0, 1) -> (max_len, 1, input_emb)


def _pe_dropout_kernel(seed_ref, x_ref, pe_ref, o_ref, *,
                       keep_threshold, inv_keep, training, hw_prng):
    """out = dropout(x + pe).  x_ref:(bR,S,E), pe_ref:(bR,1,E) broadcast along S."""
    val = x_ref[...] + pe_ref[...]

    if training and keep_threshold < (1 << 23):
        if hw_prng:
            # Dedicated hardware PRNG: no VALU cost (the software hash is
            # ~20-30 VPU ops/element, co-critical at v6e/v7x HBM rates).
            # Seeding with (seed, program_id) gives distinct streams per block.
            pltpu.prng_seed(seed_ref[0], pl.program_id(0))
            bits = pltpu.prng_random_bits(val.shape)
        else:
            # Portable splitmix32-style hash of the GLOBAL element index
            # (block offset folded in -> no mask reuse across blocks / steps).
            shape = val.shape
            ii = (jax.lax.broadcasted_iota(jnp.int32, shape, 0)
                  + pl.program_id(0) * shape[0])
            jj = jax.lax.broadcasted_iota(jnp.int32, shape, 1)
            ee = jax.lax.broadcasted_iota(jnp.int32, shape, 2)
            idx = ((ii * shape[1] + jj) * shape[2] + ee).astype(jnp.uint32)
            z = idx ^ (seed_ref[0].astype(jnp.uint32) * jnp.uint32(0x9E3779B9))
            z = (z ^ (z >> 16)) * jnp.uint32(0x7FEB352D)
            z = (z ^ (z >> 15)) * jnp.uint32(0x846CA68B)
            bits = z ^ (z >> 16)
        # Integer-domain keep test: keep with probability keep_threshold / 2^23.
        low23 = jax.lax.bitwise_and(bits, jnp.array(0x7FFFFF, bits.dtype))
        keep = low23 < jnp.array(keep_threshold, bits.dtype)
        val = jnp.where(keep, val * inv_keep, jnp.zeros_like(val))

    o_ref[...] = val.astype(o_ref.dtype)


def fwd_positional_encoding(x, pe_buffer, *, dropout_p=0.1, training=True,
                            seed=0, hw_prng=None):
    """JAX/Pallas equivalent of FwdPositionalEncoding.forward.

    NOTE: vary `seed` across training steps — the dropout mask is a deterministic
    function of (seed, block, element); it cannot reproduce torch's RNG stream.
    """
    B, S, E = x.shape
    assert B == S or S == 1, (
        "the reference module's broadcast requires x.shape[0] == x.shape[1]")
    pe_slice = pe_buffer[:S].astype(x.dtype)            # torch-style slice: (S,1,E)

    if not training:
        # Inference: plain broadcast add, fused by XLA at roofline; no Pallas.
        return x + pe_slice

    # PE addend is indexed by the *first* axis of x (B == S asserted above).
    pe_in = pe_slice if pe_slice.shape[0] == B else jnp.broadcast_to(pe_slice, (B, 1, E))

    if hw_prng is None:
        hw_prng = jax.default_backend() == "tpu"

    keep_prob = 1.0 - float(dropout_p)
    kernel = functools.partial(
        _pe_dropout_kernel,
        keep_threshold=int(round(keep_prob * (1 << 23))),
        inv_keep=(1.0 / keep_prob) if keep_prob > 0.0 else 0.0,
        training=training,
        hw_prng=hw_prng,
    )

    # Row blocking over B: ~2 MiB of x per block; ragged last block handled by
    # Pallas (grid = cdiv).  The module's real sizes always land in one block.
    row_bytes = S * E * x.dtype.itemsize
    if B * row_bytes <= _TARGET_BLOCK_BYTES:
        block_rows = B
    else:
        block_rows = max(1, _TARGET_BLOCK_BYTES // row_bytes)
    grid = (pl.cdiv(B, block_rows),)

    seed_arr = jnp.asarray([seed], dtype=jnp.int32)

    return pl.pallas_call(
        kernel,
        out_shape=jax.ShapeDtypeStruct(x.shape, x.dtype),
        grid=grid,
        in_specs=[
            pl.BlockSpec(memory_space=pltpu.SMEM),                  # seed scalar
            pl.BlockSpec((block_rows, S, E), lambda i: (i, 0, 0)),  # x block
            pl.BlockSpec((block_rows, 1, E), lambda i: (i, 0, 0)),  # tiny PE rows
        ],
        out_specs=pl.BlockSpec((block_rows, S, E), lambda i: (i, 0, 0)),
        compiler_params=pltpu.CompilerParams(
            dimension_semantics=("parallel",),        # shard blocks over v7x's 2 TCs
            vmem_limit_bytes=32 * 1024 * 1024),
    )(seed_arr, x, pe_in)


if __name__ == "__main__":
    INPUT_EMB = 14   # phyre.FeaturizedObjects._NUM_FEATURES
    MAX_LEN = 20
    D0 = D1 = 8      # must be equal for the reference broadcast to be valid
    DROPOUT = 0.1

    pe_buffer = make_pe_buffer(MAX_LEN, INPUT_EMB)
    x = jax.random.normal(jax.random.PRNGKey(0), (D0, D1, INPUT_EMB), jnp.float32)
    ref = x + pe_buffer[:D1]

    # 1) Pallas path with dropout statically disabled must equal the broadcast add.
    out_nodrop = fwd_positional_encoding(x, pe_buffer, dropout_p=0.0, training=True)
    out_nodrop = jax.block_until_ready(out_nodrop)
    assert out_nodrop.shape == x.shape and out_nodrop.dtype == x.dtype
    assert jnp.allclose(out_nodrop, ref, atol=1e-6)

    # 2) Training mode: every element is either 0 or (x+pe)/keep_prob.
    out = fwd_positional_encoding(x, pe_buffer, dropout_p=DROPOUT, training=True, seed=0)
    out = jax.block_until_ready(out)
    scaled = ref / (1.0 - DROPOUT)
    ok = jnp.isclose(out, 0.0, atol=1e-7) | jnp.isclose(out, scaled, rtol=1e-5, atol=1e-6)
    assert bool(jnp.all(ok))

    # 3) Eval mode equals the plain broadcast add (XLA path).
    out_eval = fwd_positional_encoding(x, pe_buffer, dropout_p=DROPOUT, training=False)
    out_eval = jax.block_until_ready(out_eval)
    assert jnp.allclose(out_eval, ref, atol=1e-6)

    # 4) Full-length case (exercises the complete PE table).
    x2 = jax.random.normal(jax.random.PRNGKey(1), (MAX_LEN, MAX_LEN, INPUT_EMB),
                           jnp.float32)
    out2 = jax.block_until_ready(
        fwd_positional_encoding(x2, pe_buffer, dropout_p=DROPOUT, training=True, seed=3))
    assert out2.shape == x2.shape

    print("KERNEL_OK")
</pallas_src>

<mosaic_0001>
module attributes {stable_mosaic.version = 11 : i64} {
  func.func @_pe_dropout_kernel(%arg0: i32, %arg1: memref<1xi32, #tpu.memory_space<smem>>, %arg2: memref<8x8x14xf32, #tpu.memory_space<vmem>>, %arg3: memref<8x1x14xf32, #tpu.memory_space<vmem>>, %arg4: memref<8x8x14xf32, #tpu.memory_space<vmem>>) attributes {dimension_semantics = [#tpu.dimension_semantics<parallel>], iteration_bounds = array<i64: 1>, scalar_prefetch = 0 : i64, scratch_operands = 0 : i64, tpu.core_type = #tpu.core_type<tc>, window_params = [{transform_indices = @transform_0, window_bounds = array<i64: 1>}, {transform_indices = @transform_1, window_bounds = array<i64: 8, 8, 14>}, {transform_indices = @transform_2, window_bounds = array<i64: 8, 1, 14>}, {transform_indices = @transform_3, window_bounds = array<i64: 8, 8, 14>}]} {
    %c0 = arith.constant 0 : index
    %c0_0 = arith.constant 0 : index
    %c0_1 = arith.constant 0 : index
    %0 = vector.load %arg2[%c0, %c0_0, %c0_1] : memref<8x8x14xf32, #tpu.memory_space<vmem>>, vector<8x8x14xf32>
    %c0_2 = arith.constant 0 : index
    %c0_3 = arith.constant 0 : index
    %c0_4 = arith.constant 0 : index
    %1 = vector.load %arg3[%c0_2, %c0_3, %c0_4] : memref<8x1x14xf32, #tpu.memory_space<vmem>>, vector<8x1x14xf32>
    %2 = vector.broadcast %1 : vector<8x1x14xf32> to vector<8x8x14xf32>
    %3 = arith.addf %0, %2 : vector<8x8x14xf32>
    %c0_5 = arith.constant 0 : index
    %c0_6 = arith.constant 0 : index
    %c0_7 = arith.constant 0 : index
    %4 = vector.load %arg4[%c0_5, %c0_6, %c0_7] : memref<8x8x14xf32, #tpu.memory_space<vmem>>, vector<8x8x14xf32>
    tpu.vector_store %arg4[%c0_5, %c0_6, %c0_7], %3 {strides = array<i32>} : memref<8x8x14xf32, #tpu.memory_space<vmem>>, vector<8x8x14xf32>,
    return
  }
  func.func @transform_0(%arg0: i32) -> i32 {
    %c0_i32 = arith.constant 0 : i32
    %c0_i32_0 = arith.constant 0 : i32
    return %c0_i32 : i32
  }
  func.func @transform_1(%arg0: i32) -> (i32, i32, i32) {
    %c0_i32 = arith.constant 0 : i32
    %c0_i32_0 = arith.constant 0 : i32
    %c0_i32_1 = arith.constant 0 : i32
    return %arg0, %c0_i32, %c0_i32_0 : i32, i32, i32
  }
  func.func @transform_2(%arg0: i32) -> (i32, i32, i32) {
    %c0_i32 = arith.constant 0 : i32
    %c0_i32_0 = arith.constant 0 : i32
    %c0_i32_1 = arith.constant 0 : i32
    return %arg0, %c0_i32, %c0_i32_0 : i32, i32, i32
  }
  func.func @transform_3(%arg0: i32) -> (i32, i32, i32) {
    %c0_i32 = arith.constant 0 : i32
    %c0_i32_0 = arith.constant 0 : i32
    %c0_i32_1 = arith.constant 0 : i32
    return %arg0, %c0_i32, %c0_i32_0 : i32, i32, i32
  }
}

</mosaic_0001>

<bundles_post_ra>
// kernel: tpu_custom_call.1
= control target key start
LH: loop header
LB: loop body
LE: loop exit
PB: predicated region body
PF: predicated region fallthrough
CT: control target
= control target key end

     0   :  { %9 = vsyncpa [#allocation4], 0  ;;  %s307_s0 = inlined_call_operand.<no memory space> [shape: s32[1], index: 0, kind: input, shape index: {}]   ;;  %s308_s1 = inlined_call_operand.hbm [shape: f32[8,8,14], index: 1, kind: input, shape index: {}]   ;;  %s309_s2 = inlined_call_operand.hbm [shape: f32[8,1,14], index: 2, kind: input, shape index: {}]   ;;  %s310_s3 = inlined_call_operand.hbm [shape: f32[8,8,14], index: 3, kind: output, shape index: {}]  }
   0x1   :  { %10 = vsyncpa [#allocation7], 0 }
   0x2   :  { %11 = vsyncpa [#allocation5], 0  ;;  %s230_s12 = smov [#allocation3]   ;;  %s158_s16 = scalar_lea.hbm %s308_s1, 1024 }
   0x3   :  { %s19_s13 = sshll.u32 %s230_s12, 4  ;;  %p159_p0 = scmp.ne.s32.totalorder %s308_s1, %s158_s16  ;;  %s20_s13 = int_to_ptr.vmem [resolvable:$true] %s19_s13 }
   0x4   :  { %p162_p1 = scmp.lt.u32.totalorder %s158_s16, %s308_s1 }
   0x6   :  { %p164_p2 = pnand %p162_p1, %p159_p0 }
   0x8   :  { %167 = shalt.err (!%p164_p2)
}
   0x9   :  { %s168_s20 = scalar_lea.vmem %s20_s13, 1024  ;;  %p173_p4 = scmp.lt.s32.totalorder %s20_s13, %s20_s13 }
   0xa   :  { %p169_p3 = scmp.ne.s32.totalorder %s20_s13, %s168_s20  ;;  %p174_p5 = scmp.lt.s32.totalorder %s168_s20, %s168_s20 }
   0xc   :  { %p175_p6 = por %p174_p5, %p173_p4 }
   0xe   :  { %p176_p7 = pnand %p175_p6, %p169_p3 }
  0x10   :  { %179 = shalt.err (!%p176_p7)
}
  0x11   :  { %s231_s21 = smov 128   ;;  %s232_s22 = smov 8  }
  0x12   :  { %25 = dma.hbm_to_vmem [thread:$0]  %s308_s1, 1024, %s20_s13, [#allocation4], %s231_s21, %s231_s21, %s232_s22  }
  0x13   :  { %s233_s25 = smov [#allocation6]   ;;  %s180_s29 = scalar_lea.hbm %s309_s2, 128 }
  0x14   :  { %s31_s26 = sshll.u32 %s233_s25, 4  ;;  %p181_p8 = scmp.ne.s32.totalorder %s309_s2, %s180_s29  ;;  %s32_s26 = int_to_ptr.vmem [resolvable:$true] %s31_s26 }
  0x15   :  { %p184_p9 = scmp.lt.u32.totalorder %s180_s29, %s309_s2 }
  0x17   :  { %p186_p10 = pnand %p184_p9, %p181_p8 }
  0x19   :  { %189 = shalt.err (!%p186_p10)
}
  0x1a   :  { %s190_s7 = scalar_lea.vmem %s32_s26, 128  ;;  %p195_p12 = scmp.lt.s32.totalorder %s32_s26, %s32_s26 }
  0x1b   :  { %p191_p11 = scmp.ne.s32.totalorder %s32_s26, %s190_s7  ;;  %p196_p13 = scmp.lt.s32.totalorder %s190_s7, %s190_s7 }
  0x1d   :  { %p197_p0 = por %p196_p13, %p195_p12 }
  0x1f   :  { %p198_p1 = pnand %p197_p0, %p191_p11 }
  0x21   :  { %201 = shalt.err (!%p198_p1)
}
  0x22   :  { %s234_s1 = smov 16   ;;  %s235_s8 = smov 1  }
  0x23   :  { %37 = dma.hbm_to_vmem [thread:$0]  %s309_s2, 128, %s32_s26, [#allocation7], %s234_s1, %s234_s1, %s235_s8  }
  0x24   :  { %224 = dma.done.wait [#allocation4], 1024  }
  0x25   :  { %225 = vsyncadd [#allocation4], 4294966272 }
  0x26   :  { %226 = dma.done.wait [#allocation7], 128  }
  0x27   :  { %227 = vsyncadd [#allocation7], 4294967168  ;;  %v44_v0 = vld [vmem:[#allocation3] sm:$0xff]  ;;  %vm116_vm0 = vcmask 113664   ;;  %v45_v2 = vld [vmem:[#allocation3 + $0x8] sm:$0xff]  ;;  %s236_s2 = smov [#allocation8]  }
  0x28   :  { %v143_v1 = vld [vmem:[#allocation6] ss:$0 sm:$0xff]  ;;  %v144_v4 = vld [vmem:[#allocation6 + $0x1] ss:$0 sm:$0xff]  ;;  %v46_v5 = vld [vmem:[#allocation3 + $0x10] sm:$0xff]  ;;  %s130_s11 = sshll.u32 %s236_s2, 4  ;;  %s131_s11 = int_to_ptr.vmem [resolvable:$true] %s130_s11 }
  0x29   :  { %v108_v3 = vadd.f32 %v143_v1, %v44_v0  ;;  %v145_v6 = vld [vmem:[#allocation6 + $0x2] ss:$0 sm:$0xff]  ;;  %v109_v7 = vadd.f32 %v144_v4, %v45_v2  ;;  %v47_v9 = vld [vmem:[#allocation3 + $0x18] sm:$0xff]  ;;  %v146_v10 = vld [vmem:[#allocation6 + $0x3] ss:$0 sm:$0xff]  ;;  %s202_s12 = scalar_lea.vmem %s131_s11, 1024  ;;  %p207_p3 = scmp.lt.s32.totalorder %s131_s11, %s131_s11 }
  0x2a   :  { %v110_v8 = vadd.f32 %v145_v6, %v46_v5  ;;  %v48_v11 = vld [vmem:[#allocation3 + $0x20] sm:$0xff]  ;;  %v111_v12 = vadd.f32 %v146_v10, %v47_v9  ;;  %v49_v14 = vld [vmem:[#allocation3 + $0x28] sm:$0xff]  ;;  %v50_v18 = vld [vmem:[#allocation3 + $0x30] sm:$0xff]  ;;  %p203_p2 = scmp.ne.s32.totalorder %s131_s11, %s202_s12  ;;  %p208_p4 = scmp.lt.s32.totalorder %s202_s12, %s202_s12 }
  0x2b   :  { %117 = vst.msk [vmem:[#allocation8] sm:$0xff] %vm116_vm0, %v108_v3  ;;  %v147_v13 = vld [vmem:[#allocation6 + $0x4] ss:$0 sm:$0xff]  ;;  %v148_v15 = vld [vmem:[#allocation6 + $0x5] ss:$0 sm:$0xff]  ;;  %118 = vst.msk [vmem:[#allocation8 + $0x8] sm:$0xff] %vm116_vm0, %v109_v7 }
  0x2c   :  { %119 = vst.msk [vmem:[#allocation8 + $0x10] sm:$0xff] %vm116_vm0, %v110_v8  ;;  %v112_v16 = vadd.f32 %v147_v13, %v48_v11  ;;  %v113_v17 = vadd.f32 %v148_v15, %v49_v14  ;;  %v149_v19 = vld [vmem:[#allocation6 + $0x6] ss:$0 sm:$0xff]  ;;  %v51_v20 = vld [vmem:[#allocation3 + $0x38] sm:$0xff]  ;;  %120 = vst.msk [vmem:[#allocation8 + $0x18] sm:$0xff] %vm116_vm0, %v111_v12  ;;  %p209_p5 = por %p208_p4, %p207_p3 }
  0x2d   :  { %v114_v21 = vadd.f32 %v149_v19, %v50_v18  ;;  %v150_v22 = vld [vmem:[#allocation6 + $0x7] ss:$0 sm:$0xff] }
  0x2e   :  { %121 = vst.msk [vmem:[#allocation8 + $0x20] sm:$0xff] %vm116_vm0, %v112_v16  ;;  %122 = vst.msk [vmem:[#allocation8 + $0x28] sm:$0xff] %vm116_vm0, %v113_v17  ;;  %v115_v23 = vadd.f32 %v150_v22, %v51_v20  ;;  %p210_p6 = pnand %p209_p5, %p203_p2 }
  0x2f   :  { %123 = vst.msk [vmem:[#allocation8 + $0x30] sm:$0xff] %vm116_vm0, %v114_v21 }
  0x30   :  { %124 = vst.msk [vmem:[#allocation8 + $0x38] sm:$0xff] %vm116_vm0, %v115_v23 }
  0x31   :  { %213 = shalt.err (!%p210_p6)
}
  0x32   :  { %s214_s15 = scalar_lea.hbm %s310_s3, 1024 }
  0x33   :  { %p215_p7 = scmp.ne.s32.totalorder %s310_s3, %s214_s15  ;;  %p218_p8 = scmp.lt.u32.totalorder %s214_s15, %s310_s3 }
  0x35   :  { %p220_p9 = pnand %p218_p8, %p215_p7 }
  0x37   :  { %223 = shalt.err (!%p220_p9)
}
  0x38   :  { %136 = dma.vmem_to_hbm [thread:$0]  %s131_s11, 1024, %s310_s3, [#allocation5], %s231_s21, %s231_s21, %s232_s22  }
  0x39   :  { %228 = dma.done.wait [#allocation5], 1024  }
  0x3a   :  { %229 = vsyncadd [#allocation5], 4294966272 }
  0x3b   :  { %140 = vsyncpa [#allocation4], 1 }
  0x3c   :  { %141 = vsyncpa [#allocation7], 1 }
  0x3d   :  { %142 = vsyncpa [#allocation5], 1 }

</bundles_post_ra>
